<compile_context>
chip_gen: v7x
topology: tpu7x:2x2x1
jax: 0.10.0
libtpu: 0.0.40
codegen_flags: <defaults>
</compile_context>

<pallas_src>
import functools
import math
from collections import OrderedDict

import jax
import jax.numpy as jnp
from jax.experimental import pallas as pl
from jax.experimental.pallas import tpu as pltpu


_LANE = 128
_PACK = 16            # bf16 packs 16 sublanes per vreg
_MEAN = jnp.array([0.485, 0.456, 0.406], jnp.float32)
_STD = jnp.array([0.229, 0.224, 0.225], jnp.float32)
_BBOX_CLIP = math.log(1000.0 / 16.0)


def _round_up(x, m):
    return (x + m - 1) // m * m


def _kpad_for(k):
    # K <= 512: keep the reduction un-tiled; otherwise tile K by 512.
    return _round_up(k, _PACK) if k <= 512 else _round_up(k, 512)


def _act(x, name):
    if name == "relu":
        return jnp.maximum(x, 0.0)
    if name == "sigmoid":
        return jax.nn.sigmoid(x)
    return x


def _apply_activation(acc, activation, col_off):
    if isinstance(activation, tuple):
        # split activation for fused sibling heads: cols [0,split) -> act_lo,
        # cols [split,...) -> act_hi (col_off is a hoisted value / python 0).
        act_lo, act_hi, split = activation
        col = jax.lax.broadcasted_iota(jnp.int32, acc.shape, 1) + col_off
        return jnp.where(col < split, _act(acc, act_lo), _act(acc, act_hi))
    return _act(acc, activation)


# ----------------------------------------------------------------------------
# Matmul + bias + (split-)activation Pallas kernels
# ----------------------------------------------------------------------------
def _mm_bias_fast_kernel(x_ref, w_ref, b_ref, o_ref, *, activation, tn, multi_n):
    """Single-K fast path: no scratch, no pl.when; program_id only if N is tiled."""
    col_off = pl.program_id(1) * tn if multi_n else 0
    acc = jnp.dot(x_ref[...], w_ref[...], preferred_element_type=jnp.float32)
    acc = acc + b_ref[...]
    o_ref[...] = _apply_activation(acc, activation, col_off).astype(o_ref.dtype)


def _mm_bias_acc_kernel(x_ref, w_ref, b_ref, o_ref, acc_ref, *, activation, tn, multi_n):
    """General K-tiled path; all program_id calls hoisted to the kernel top level."""
    k = pl.program_id(2)
    col_off = pl.program_id(1) * tn if multi_n else 0
    is_first = k == 0
    is_last = k == pl.num_programs(2) - 1

    @pl.when(is_first)
    def _init():
        acc_ref[...] = jnp.zeros_like(acc_ref)

    acc_ref[...] += jnp.dot(x_ref[...], w_ref[...], preferred_element_type=jnp.float32)

    @pl.when(is_last)
    def _finalize():
        acc = acc_ref[...] + b_ref[...]
        o_ref[...] = _apply_activation(acc, activation, col_off).astype(o_ref.dtype)


def matmul_bias(x, lin, activation="none", out_dtype=jnp.float32):
    """x:(M,K) @ pre-prepared bf16 lane-padded weights -> (M, lin['n']) out_dtype."""
    m, k = x.shape
    assert k == lin["k"], (k, lin["k"])
    kp, np_ = lin["kpad"], lin["npad"]

    mp16 = _round_up(m, _PACK)
    tm = 256 if mp16 >= 512 else mp16          # >=2 parallel M tiles for big launches
    mp = _round_up(mp16, tm)
    tn = 256 if (np_ % 256 == 0 and np_ >= 256) else 128
    tk = min(512, kp)

    x = x.astype(jnp.bfloat16)                  # bf16 MXU operands on all generations
    if (mp, kp) != (m, k):
        x = jnp.pad(x, ((0, mp - m), (0, kp - k)))

    gm, gn, gk = mp // tm, np_ // tn, kp // tk
    multi_n = gn > 1
    cparams = pltpu.CompilerParams(
        dimension_semantics=("parallel", "parallel") if gk == 1
        else ("parallel", "parallel", "arbitrary"),
        vmem_limit_bytes=32 * 1024 * 1024,
    )

    if gk == 1:
        out = pl.pallas_call(
            functools.partial(_mm_bias_fast_kernel, activation=activation,
                              tn=tn, multi_n=multi_n),
            out_shape=jax.ShapeDtypeStruct((mp, np_), out_dtype),
            grid_spec=pltpu.PrefetchScalarGridSpec(
                num_scalar_prefetch=0,
                grid=(gm, gn),
                in_specs=[
                    pl.BlockSpec((tm, kp), lambda i, j: (i, 0)),
                    pl.BlockSpec((kp, tn), lambda i, j: (0, j)),
                    pl.BlockSpec((1, tn), lambda i, j: (0, j)),
                ],
                out_specs=pl.BlockSpec((tm, tn), lambda i, j: (i, j)),
            ),
            compiler_params=cparams,
        )(x, lin["w"], lin["b"])
    else:
        out = pl.pallas_call(
            functools.partial(_mm_bias_acc_kernel, activation=activation,
                              tn=tn, multi_n=multi_n),
            out_shape=jax.ShapeDtypeStruct((mp, np_), out_dtype),
            grid_spec=pltpu.PrefetchScalarGridSpec(
                num_scalar_prefetch=0,
                grid=(gm, gn, gk),
                in_specs=[
                    pl.BlockSpec((tm, tk), lambda i, j, kk: (i, kk)),
                    pl.BlockSpec((tk, tn), lambda i, j, kk: (kk, j)),
                    pl.BlockSpec((1, tn), lambda i, j, kk: (0, j)),
                ],
                out_specs=pl.BlockSpec((tm, tn), lambda i, j, kk: (i, j)),
                scratch_shapes=[pltpu.VMEM((tm, tn), jnp.float32)],
            ),
            compiler_params=cparams,
        )(x, lin["w"], lin["b"])
    return out[:m, :lin["n"]]


# ----------------------------------------------------------------------------
# Fused RPN kernel: shared 3x3 conv (relu) -> obj(sigmoid)/box heads, one launch
# ----------------------------------------------------------------------------
def _rpn_fused_kernel(x_ref, wc_ref, bc_ref, wh_ref, bh_ref, o_ref, *, split):
    t = jnp.dot(x_ref[...], wc_ref[...], preferred_element_type=jnp.float32) + bc_ref[...]
    t = jnp.maximum(t, 0.0)
    h = jnp.dot(t.astype(jnp.bfloat16), wh_ref[...],
                preferred_element_type=jnp.float32) + bh_ref[...]
    col = jax.lax.broadcasted_iota(jnp.int32, h.shape, 1)
    o_ref[...] = jnp.where(col < split, jax.nn.sigmoid(h), h)


def rpn_head_fused(cols, rp):
    m, k = cols.shape
    conv, head = rp["conv"], rp["head"]
    assert k == conv["k"] and head["kpad"] == conv["npad"]
    kp = conv["kpad"]
    mp = _round_up(m, _PACK)
    x = jnp.pad(cols.astype(jnp.bfloat16), ((0, mp - m), (0, kp - k)))
    npad = head["npad"]
    out = pl.pallas_call(
        functools.partial(_rpn_fused_kernel, split=1),
        out_shape=jax.ShapeDtypeStruct((mp, npad), jnp.float32),
        grid_spec=pltpu.PrefetchScalarGridSpec(
            num_scalar_prefetch=0,
            grid=(1,),
            in_specs=[
                pl.BlockSpec((mp, kp), lambda i: (0, 0)),
                pl.BlockSpec(conv["w"].shape, lambda i: (0, 0)),
                pl.BlockSpec(conv["b"].shape, lambda i: (0, 0)),
                pl.BlockSpec(head["w"].shape, lambda i: (0, 0)),
                pl.BlockSpec(head["b"].shape, lambda i: (0, 0)),
            ],
            out_specs=pl.BlockSpec((mp, npad), lambda i: (0, 0)),
        ),
        compiler_params=pltpu.CompilerParams(
            dimension_semantics=("arbitrary",),
            vmem_limit_bytes=32 * 1024 * 1024),
    )(x, conv["w"], conv["b"], head["w"], head["b"])
    return out[:m, :head["n"]]


# ----------------------------------------------------------------------------
# Fused ROI-head kernel: per-cell polarity + fc1 -> fc2 -> cls/box pred, one launch
# ----------------------------------------------------------------------------
def _roi_fused_kernel(x_ref, wpol_ref, bpol_ref, w1_ref, b1_ref, w2_ref, b2_ref,
                      wp_ref, bp_ref, pol_ref, pred_ref):
    x = x_ref[...]
    pol = jnp.dot(x, wpol_ref[...], preferred_element_type=jnp.float32) + bpol_ref[...]
    pol_ref[...] = jax.nn.sigmoid(pol)
    h1 = jnp.maximum(
        jnp.dot(x, w1_ref[...], preferred_element_type=jnp.float32) + b1_ref[...], 0.0)
    h2 = jnp.maximum(
        jnp.dot(h1.astype(jnp.bfloat16), w2_ref[...],
                preferred_element_type=jnp.float32) + b2_ref[...], 0.0)
    pred_ref[...] = jnp.dot(h2.astype(jnp.bfloat16), wp_ref[...],
                            preferred_element_type=jnp.float32) + bp_ref[...]


def roi_fc_fused(x, roi):
    m, k = x.shape
    polh, fc1, fc2, pred = roi["pol"], roi["fc1"], roi["fc2"], roi["pred"]
    assert k == fc1["k"] and polh["kpad"] == fc1["kpad"]
    assert fc2["kpad"] == fc1["npad"] and pred["kpad"] == fc2["npad"]
    kp = fc1["kpad"]
    mp = _round_up(m, _PACK)
    xb = jnp.pad(x.astype(jnp.bfloat16), ((0, mp - m), (0, kp - k)))
    pol_out, pred_out = pl.pallas_call(
        _roi_fused_kernel,
        out_shape=(jax.ShapeDtypeStruct((mp, polh["npad"]), jnp.float32),
                   jax.ShapeDtypeStruct((mp, pred["npad"]), jnp.float32)),
        grid_spec=pltpu.PrefetchScalarGridSpec(
            num_scalar_prefetch=0,
            grid=(1,),
            in_specs=[
                pl.BlockSpec((mp, kp), lambda i: (0, 0)),
                pl.BlockSpec(polh["w"].shape, lambda i: (0, 0)),
                pl.BlockSpec(polh["b"].shape, lambda i: (0, 0)),
                pl.BlockSpec(fc1["w"].shape, lambda i: (0, 0)),
                pl.BlockSpec(fc1["b"].shape, lambda i: (0, 0)),
                pl.BlockSpec(fc2["w"].shape, lambda i: (0, 0)),
                pl.BlockSpec(fc2["b"].shape, lambda i: (0, 0)),
                pl.BlockSpec(pred["w"].shape, lambda i: (0, 0)),
                pl.BlockSpec(pred["b"].shape, lambda i: (0, 0)),
            ],
            out_specs=(pl.BlockSpec((mp, polh["npad"]), lambda i: (0, 0)),
                       pl.BlockSpec((mp, pred["npad"]), lambda i: (0, 0))),
        ),
        compiler_params=pltpu.CompilerParams(
            dimension_semantics=("arbitrary",),
            vmem_limit_bytes=32 * 1024 * 1024),
    )(xb, polh["w"], polh["b"], fc1["w"], fc1["b"], fc2["w"], fc2["b"],
      pred["w"], pred["b"])
    return pol_out[:m, :polh["n"]], pred_out[:m, :pred["n"]]


# ----------------------------------------------------------------------------
# Weight preparation: fuse / fold / pad / cast ONCE at init
# ----------------------------------------------------------------------------
def prep_linear(w2d, b, kpad=None):
    k, n = w2d.shape
    kp = _kpad_for(k) if kpad is None else kpad
    assert kp >= k
    np_ = _round_up(n, _LANE)
    w = jnp.zeros((kp, np_), jnp.float32).at[:k, :n].set(w2d.astype(jnp.float32))
    bp = jnp.zeros((1, np_), jnp.float32).at[0, :n].set(b.astype(jnp.float32))
    return {"w": w.astype(jnp.bfloat16), "b": bp,
            "k": k, "n": n, "kpad": kp, "npad": np_}


def prep_conv(w4, b, stride, pad):
    kh, kw, cin, cout = w4.shape
    lin = prep_linear(w4.reshape(kh * kw * cin, cout), b)
    lin.update(kh=kh, kw=kw, stride=stride, pad=pad)
    return lin


# ----------------------------------------------------------------------------
# Conv = im2col (XLA glue) + Pallas matmul
# ----------------------------------------------------------------------------
def _im2col(x, kh, kw, stride, pad):
    if pad:
        x = jnp.pad(x, ((0, 0), (pad, pad), (pad, pad), (0, 0)))
    n, h, w, c = x.shape
    oh = (h - kh) // stride + 1
    ow = (w - kw) // stride + 1
    patches = [x[:, i:i + oh * stride:stride, j:j + ow * stride:stride, :]
               for i in range(kh) for j in range(kw)]
    cols = jnp.concatenate(patches, axis=-1)
    # TODO(synk): fold the kh*kw shifted-window loads into the matmul K loop to avoid
    # materializing im2col in HBM (dominant only at realistic image sizes).
    return cols.reshape(n * oh * ow, kh * kw * c), oh, ow


def conv2d_nhwc(x, cl, activation="none", out_dtype=jnp.float32):
    if cl["kh"] == 1 and cl["kw"] == 1 and cl["stride"] == 1 and cl["pad"] == 0:
        n, h, w, c = x.shape
        y = matmul_bias(x.reshape(n * h * w, c), cl, activation, out_dtype)
        return y.reshape(n, h, w, cl["n"])
    cols, oh, ow = _im2col(x, cl["kh"], cl["kw"], cl["stride"], cl["pad"])
    y = matmul_bias(cols, cl, activation, out_dtype)
    return y.reshape(x.shape[0], oh, ow, cl["n"])


# ----------------------------------------------------------------------------
# Box helpers (glue)
# ----------------------------------------------------------------------------
def decode_boxes(anchors, deltas, image_size):
    w = anchors[..., 2] - anchors[..., 0]
    h = anchors[..., 3] - anchors[..., 1]
    cx = anchors[..., 0] + 0.5 * w
    cy = anchors[..., 1] + 0.5 * h
    dx, dy, dw, dh = (deltas[..., i] for i in range(4))
    ncx = cx + dx * w
    ncy = cy + dy * h
    nw = w * jnp.exp(jnp.clip(dw, -_BBOX_CLIP, _BBOX_CLIP))
    nh = h * jnp.exp(jnp.clip(dh, -_BBOX_CLIP, _BBOX_CLIP))
    x1 = jnp.clip(ncx - 0.5 * nw, 0.0, float(image_size[1]))
    y1 = jnp.clip(ncy - 0.5 * nh, 0.0, float(image_size[0]))
    x2 = jnp.clip(ncx + 0.5 * nw, 0.0, float(image_size[1]))
    y2 = jnp.clip(ncy + 0.5 * nh, 0.0, float(image_size[0]))
    return jnp.stack([x1, y1, jnp.maximum(x2, x1 + 1e-3),
                      jnp.maximum(y2, y1 + 1e-3)], axis=-1)


def roi_pool(feat, boxes, out_size, spatial_scale):
    # feat: [H, W, C] single image; boxes: [R, 4] (x1,y1,x2,y2) in image coords.
    H, W, _ = feat.shape
    x1 = boxes[:, 0] * spatial_scale
    y1 = boxes[:, 1] * spatial_scale
    x2 = boxes[:, 2] * spatial_scale
    y2 = boxes[:, 3] * spatial_scale
    t = (jnp.arange(out_size, dtype=jnp.float32) + 0.5) / out_size
    ys = y1[:, None] + t[None, :] * (y2 - y1)[:, None]
    xs = x1[:, None] + t[None, :] * (x2 - x1)[:, None]
    yi = jnp.clip(jnp.floor(ys).astype(jnp.int32), 0, H - 1)
    xi = jnp.clip(jnp.floor(xs).astype(jnp.int32), 0, W - 1)
    return feat[yi[:, :, None], xi[:, None, :], :]            # [R, P, P, C]


# ----------------------------------------------------------------------------
# Sub-modules (same dataflow as the PyTorch reference)
# ----------------------------------------------------------------------------
def transform_forward(images_nchw):
    """GeneralizedRCNNTransform: (x-mean)/std is folded into the first backbone conv,
    so only the NCHW->NHWC move remains here."""
    B, C, H, W = images_nchw.shape
    return jnp.transpose(images_nchw, (0, 2, 3, 1)), [(H, W)] * B


def transform_postprocess(detections, image_sizes, original_image_sizes):
    out = []
    for det, isz, osz in zip(detections, image_sizes, original_image_sizes):
        ry = osz[0] / isz[0]
        rx = osz[1] / isz[1]
        scale = jnp.array([rx, ry, rx, ry], jnp.float32)
        out.append({"boxes": det["boxes"] * scale,
                    "labels": det["labels"],
                    "scores": det["scores"]})
    return out


def backbone_forward(bb, x):
    # bf16 chain outputs: every result only feeds another matmul / pooling.
    f0 = conv2d_nhwc(x, bb["c0"], "relu", jnp.bfloat16)    # [B,16,16,C] (norm folded in)
    f1 = conv2d_nhwc(f0, bb["c1"], "relu", jnp.bfloat16)   # [B, 8, 8,C]
    f2 = conv2d_nhwc(f1, bb["c2"], "relu", jnp.bfloat16)   # [B, 4, 4,C]
    f3 = conv2d_nhwc(f2, bb["c3"], "relu", jnp.bfloat16)   # [B, 2, 2,C]
    return OrderedDict([("0", f0), ("1", f1), ("2", f2), ("3", f3)])


def polar_net_forward(pp, feat):
    """Fused polarity (sigmoid, 1 col) + transformed feature (relu, C cols) head."""
    B, H, W, C = feat.shape
    y = matmul_bias(feat.reshape(B * H * W, C), pp["fused"], ("sigmoid", "relu", 1))
    polarity = y[:, :1].reshape(B, H, W, 1)
    new_feat = y[:, 1:].reshape(B, H, W, C)
    return polarity, new_feat


def rpn_forward(rp, features, image_size, num_proposals=10):
    B = next(iter(features.values())).shape[0]
    cols_all, shapes = [], []
    for feat in features.values():
        _, H, W, _ = feat.shape
        cols, _, _ = _im2col(feat, 3, 3, 1, 1)
        cols_all.append(cols)
        shapes.append((H, W))
    # shared 3x3 conv + fused obj/box heads over ALL FPN levels: ONE launch.
    head = rpn_head_fused(jnp.concatenate(cols_all, axis=0), rp)   # [:,0]=obj, [:,1:5]=deltas

    anchors_l, scores_l, deltas_l = [], [], []
    off = 0
    for (H, W) in shapes:
        n = B * H * W
        scores_l.append(head[off:off + n, 0].reshape(B, H * W))
        deltas_l.append(head[off:off + n, 1:5].reshape(B, H * W, 4))
        off += n
        stride = image_size[0] // H
        ys = (jnp.arange(H, dtype=jnp.float32) + 0.5) * stride
        xs = (jnp.arange(W, dtype=jnp.float32) + 0.5) * stride
        cy, cx = jnp.meshgrid(ys, xs, indexing="ij")
        size = 4.0 * stride
        a = jnp.stack([cx - size / 2, cy - size / 2,
                       cx + size / 2, cy + size / 2], axis=-1)
        anchors_l.append(jnp.broadcast_to(a, (B, H, W, 4)).reshape(B, H * W, 4))

    boxes = decode_boxes(jnp.concatenate(anchors_l, 1),
                         jnp.concatenate(deltas_l, 1), image_size)
    scores = jnp.concatenate(scores_l, 1)
    # TODO(synk): proposal NMS has no clean Pallas equivalent; top-k selection only.
    _, top_idx = jax.lax.top_k(scores, num_proposals)
    idx = jnp.broadcast_to(top_idx[..., None], top_idx.shape + (4,))
    proposals = jnp.take_along_axis(boxes, idx, axis=1)            # [B,R,4]
    return proposals, {}


def roi_heads_forward(rh, features, proposals, image_sizes, targets, polarity,
                      feat_k, topk=10):
    del targets  # eval mode
    feat = features[feat_k]                           # [B, Hf, Wf, C]
    B, Hf, Wf, C = feat.shape
    R = proposals.shape[1]
    P = rh["pool"]
    spatial_scale = Hf / image_sizes[0][0]

    # TODO(synk): ROI pooling is a data-dependent 2-D gather; kept as vmapped XLA glue.
    pool_fn = jax.vmap(lambda f, b: roi_pool(f, b, P, spatial_scale))
    roi_feats = pool_fn(feat, proposals)                                   # [B,R,P,P,C]
    roi_pol_map = pool_fn(polarity, proposals).reshape(B * R, -1).mean(axis=1)

    # ONE fused launch: per-cell polar_net polarity + fc1 -> fc2 -> cls/box predictor.
    x = roi_feats.reshape(B * R, P * P * C)
    pol_cells, pred = roi_fc_fused(x, rh)                 # (BR, P*P), (BR, 5*nc)
    roi_pol_net = pol_cells.mean(axis=1)
    roi_polarity = 0.5 * (roi_pol_map + roi_pol_net)

    nc = rh["num_classes"]
    cls_prob = jax.nn.softmax(pred[:, :nc], axis=-1)      # tiny; kept out of the kernel
    box_deltas = pred[:, nc:].reshape(B * R, nc, 4)

    scores = cls_prob * roi_polarity[:, None]             # polarity-modulated scores
    fg = scores[:, 1:]
    labels = jnp.argmax(fg, axis=1) + 1
    best = jnp.max(fg, axis=1)
    sel_deltas = box_deltas[jnp.arange(B * R), labels]

    boxes = decode_boxes(proposals.reshape(B * R, 4), sel_deltas,
                         image_sizes[0]).reshape(B, R, 4)
    best = best.reshape(B, R)
    labels = labels.reshape(B, R)

    k = min(topk, R)
    top_s, top_i = jax.lax.top_k(best, k)
    det_boxes = jnp.take_along_axis(boxes, jnp.broadcast_to(top_i[..., None],
                                                            (B, k, 4)), axis=1)
    det_labels = jnp.take_along_axis(labels, top_i, axis=1)
    detections = [{"boxes": det_boxes[b], "labels": det_labels[b], "scores": top_s[b]}
                  for b in range(B)]
    return detections, {}


# ----------------------------------------------------------------------------
# Parameter preparation (fold / fuse / pad / bf16 — once)
# ----------------------------------------------------------------------------
def prepare_params(raw, num_classes=3, P=2):
    C = raw["backbone"]["w0"].shape[-1]

    # Fold per-channel (x - mean)/std normalization into the first conv.
    w0 = raw["backbone"]["w0"] / _STD[None, None, :, None]
    b0 = raw["backbone"]["b0"] - jnp.einsum("ijcn,c->n", raw["backbone"]["w0"],
                                            _MEAN / _STD)
    backbone = {
        "c0": prep_conv(w0, b0, stride=1, pad=1),
        "c1": prep_conv(raw["backbone"]["w1"], raw["backbone"]["b1"], 2, 1),
        "c2": prep_conv(raw["backbone"]["w2"], raw["backbone"]["b2"], 2, 1),
        "c3": prep_conv(raw["backbone"]["w3"], raw["backbone"]["b3"], 2, 1),
    }

    pol_w = raw["polar"]["pol_w"].reshape(C, 1)
    pol_b = raw["polar"]["pol_b"]
    polar = {"fused": prep_linear(
        jnp.concatenate([pol_w, raw["polar"]["feat_w"].reshape(C, C)], axis=1),
        jnp.concatenate([pol_b, raw["polar"]["feat_b"]]))}

    rpn_conv = prep_conv(raw["rpn"]["conv_w"], raw["rpn"]["conv_b"], 1, 1)
    rpn_head = prep_linear(
        jnp.concatenate([raw["rpn"]["obj_w"].reshape(C, 1),
                         raw["rpn"]["box_w"].reshape(C, 4)], axis=1),
        jnp.concatenate([raw["rpn"]["obj_b"], raw["rpn"]["box_b"]]),
        kpad=rpn_conv["npad"])                      # head consumes the padded conv output
    rpn = {"conv": rpn_conv, "head": rpn_head}

    # Per-cell polar_net polarity applied to each pooled cell (kron block-diagonal).
    pol_block = jnp.kron(jnp.eye(P * P, dtype=jnp.float32), pol_w)      # (P*P*C, P*P)
    fc1 = prep_linear(raw["roi"]["fc1_w"], raw["roi"]["fc1_b"])
    polh = prep_linear(pol_block, jnp.tile(pol_b, P * P), kpad=fc1["kpad"])
    fc2 = prep_linear(raw["roi"]["fc2_w"], raw["roi"]["fc2_b"], kpad=fc1["npad"])
    predp = prep_linear(
        jnp.concatenate([raw["roi"]["cls_w"], raw["roi"]["box_w"]], axis=1),
        jnp.concatenate([raw["roi"]["cls_b"], raw["roi"]["box_b"]]),
        kpad=fc2["npad"])
    roi = {"pol": polh, "fc1": fc1, "fc2": fc2, "pred": predp,
           "num_classes": num_classes, "pool": P}
    return {"backbone": backbone, "polar": polar, "rpn": rpn, "roi": roi}


# ----------------------------------------------------------------------------
# GeneralizedRCNN
# ----------------------------------------------------------------------------
class GeneralizedRCNN:
    def __init__(self, raw_params, mtype="a", num_classes=3, pool=2):
        self.params = prepare_params(raw_params, num_classes=num_classes, P=pool)
        if "a" in mtype:
            self.feat_k = "2"
        elif "b" in mtype:
            self.feat_k = "1"
        elif "c" in mtype:
            self.feat_k = "0"
        else:
            self.feat_k = "3"
        self.training = False
        self.extracting_polarity = False
        self.trace_module = False
        self._has_warned = False

    def eager_outputs(self, losses, detections):
        if self.training and (not self.extracting_polarity):
            return losses
        return detections

    def forward(self, images, targets=None):
        if self.training and targets is None:
            raise ValueError("Targets should be passed during training time")
        original_image_sizes = []
        for img in images:
            img_size = img.shape[-2:]
            assert len(img_size) == 2
            original_image_sizes.append((img_size[0], img_size[1]))

        images_nhwc, image_sizes = transform_forward(images)
        features = backbone_forward(self.params["backbone"], images_nhwc)
        # multi-level features -> polar_net path (matches the reference else-branch)
        polarity, features[self.feat_k] = polar_net_forward(
            self.params["polar"], features[self.feat_k])
        proposals, proposal_losses = rpn_forward(
            self.params["rpn"], features, image_sizes[0])
        detections, detector_losses = roi_heads_forward(
            self.params["roi"], features, proposals, image_sizes,
            targets=targets, polarity=polarity, feat_k=self.feat_k, topk=10)
        detections = transform_postprocess(detections, image_sizes,
                                           original_image_sizes)
        losses = {}
        losses.update(detector_losses)
        losses.update(proposal_losses)
        if self.trace_module:
            return detections
        return self.eager_outputs(losses, detections)


# ----------------------------------------------------------------------------
# Deterministic parameter init (raw, PyTorch-shaped)
# ----------------------------------------------------------------------------
def init_params(key, cin=3, C=8, num_classes=3, P=2, hidden=32):
    ks = jax.random.split(key, 16)

    def w(k, shape, scale):
        return jax.random.normal(k, shape, jnp.float32) * scale

    return {
        "backbone": {
            "w0": w(ks[0], (3, 3, cin, C), 0.1), "b0": jnp.zeros((C,), jnp.float32),
            "w1": w(ks[1], (3, 3, C, C), 0.1),   "b1": jnp.zeros((C,), jnp.float32),
            "w2": w(ks[2], (3, 3, C, C), 0.1),   "b2": jnp.zeros((C,), jnp.float32),
            "w3": w(ks[3], (3, 3, C, C), 0.1),   "b3": jnp.zeros((C,), jnp.float32),
        },
        "polar": {
            "pol_w": w(ks[4], (1, 1, C, 1), 0.1),  "pol_b": jnp.zeros((1,), jnp.float32),
            "feat_w": w(ks[5], (1, 1, C, C), 0.1), "feat_b": jnp.zeros((C,), jnp.float32),
        },
        "rpn": {
            "conv_w": w(ks[6], (3, 3, C, C), 0.1), "conv_b": jnp.zeros((C,), jnp.float32),
            "obj_w": w(ks[7], (1, 1, C, 1), 0.1),  "obj_b": jnp.zeros((1,), jnp.float32),
            "box_w": w(ks[8], (1, 1, C, 4), 0.01), "box_b": jnp.zeros((4,), jnp.float32),
        },
        "roi": {
            "fc1_w": w(ks[9], (P * P * C, hidden), 0.1),
            "fc1_b": jnp.zeros((hidden,), jnp.float32),
            "fc2_w": w(ks[10], (hidden, hidden), 0.1),
            "fc2_b": jnp.zeros((hidden,), jnp.float32),
            "cls_w": w(ks[11], (hidden, num_classes), 0.1),
            "cls_b": jnp.zeros((num_classes,), jnp.float32),
            "box_w": w(ks[12], (hidden, num_classes * 4), 0.01),
            "box_b": jnp.zeros((num_classes * 4,), jnp.float32),
        },
    }


if __name__ == "__main__":
    key = jax.random.PRNGKey(0)
    pkey, ikey = jax.random.split(key)
    raw_params = init_params(pkey)

    # PyTorch-style NCHW image batch (B=2, C=3, H=W=16)
    images = jax.random.uniform(ikey, (2, 3, 16, 16), jnp.float32)

    model = GeneralizedRCNN(raw_params, mtype="a")
    detections = model.forward(images)

    for det in detections:
        jax.block_until_ready(det["boxes"])
        jax.block_until_ready(det["scores"])
        jax.block_until_ready(det["labels"])

    print("KERNEL_OK")
</pallas_src>

<mosaic_0001>
module attributes {stable_mosaic.version = 11 : i64} {
  func.func @_mm_bias_fast_kernel(%arg0: i32, %arg1: i32, %arg2: memref<256x32xbf16, #tpu.memory_space<vmem>>, %arg3: memref<32x128xbf16, #tpu.memory_space<vmem>>, %arg4: memref<1x128xf32, #tpu.memory_space<vmem>>, %arg5: memref<256x128xbf16, #tpu.memory_space<vmem>>) attributes {dimension_semantics = [#tpu.dimension_semantics<parallel>, #tpu.dimension_semantics<parallel>], iteration_bounds = array<i64: 2, 1>, scalar_prefetch = 0 : i64, scratch_operands = 0 : i64, tpu.core_type = #tpu.core_type<tc>, window_params = [{transform_indices = @transform_0, window_bounds = array<i64: 256, 32>}, {transform_indices = @transform_1, window_bounds = array<i64: 32, 128>}, {transform_indices = @transform_2, window_bounds = array<i64: 1, 128>}, {transform_indices = @transform_3, window_bounds = array<i64: 256, 128>}]} {
    %c0 = arith.constant 0 : index
    %c0_0 = arith.constant 0 : index
    %0 = vector.load %arg2[%c0, %c0_0] : memref<256x32xbf16, #tpu.memory_space<vmem>>, vector<256x32xbf16>
    %c0_1 = arith.constant 0 : index
    %c0_2 = arith.constant 0 : index
    %1 = vector.load %arg3[%c0_1, %c0_2] : memref<32x128xbf16, #tpu.memory_space<vmem>>, vector<32x128xbf16>
    %cst = arith.constant dense<0.000000e+00> : vector<256x128xf32>
    %2 = tpu.matmul %0, %1, %cst {dimension_numbers = #tpu.dot_dimension_numbers<[1], [0], [0], [1], [0, 0, 1, 1], [], []>} : vector<256x32xbf16>, vector<32x128xbf16>, vector<256x128xf32> -> vector<256x128xf32>
    %c0_3 = arith.constant 0 : index
    %c0_4 = arith.constant 0 : index
    %3 = vector.load %arg4[%c0_3, %c0_4] : memref<1x128xf32, #tpu.memory_space<vmem>>, vector<1x128xf32>
    %4 = vector.broadcast %3 : vector<1x128xf32> to vector<256x128xf32>
    %5 = arith.addf %2, %4 : vector<256x128xf32>
    %cst_5 = arith.constant 0.000000e+00 : f32
    %6 = vector.broadcast %cst_5 : f32 to vector<256x128xf32>
    %7 = arith.maximumf %5, %6 : vector<256x128xf32>
    %8 = arith.truncf %7 : vector<256x128xf32> to vector<256x128xbf16>
    %c0_6 = arith.constant 0 : index
    %c0_7 = arith.constant 0 : index
    %9 = vector.load %arg5[%c0_6, %c0_7] : memref<256x128xbf16, #tpu.memory_space<vmem>>, vector<256x128xbf16>
    tpu.vector_store %arg5[%c0_6, %c0_7], %8 {strides = array<i32>} : memref<256x128xbf16, #tpu.memory_space<vmem>>, vector<256x128xbf16>,
    return
  }
  func.func @transform_0(%arg0: i32, %arg1: i32) -> (i32, i32) {
    %c0_i32 = arith.constant 0 : i32
    %c0_i32_0 = arith.constant 0 : i32
    return %arg0, %c0_i32 : i32, i32
  }
  func.func @transform_1(%arg0: i32, %arg1: i32) -> (i32, i32) {
    %c0_i32 = arith.constant 0 : i32
    %c0_i32_0 = arith.constant 0 : i32
    return %c0_i32, %arg1 : i32, i32
  }
  func.func @transform_2(%arg0: i32, %arg1: i32) -> (i32, i32) {
    %c0_i32 = arith.constant 0 : i32
    %c0_i32_0 = arith.constant 0 : i32
    return %c0_i32, %arg1 : i32, i32
  }
  func.func @transform_3(%arg0: i32, %arg1: i32) -> (i32, i32) {
    %c0_i32 = arith.constant 0 : i32
    return %arg0, %arg1 : i32, i32
  }
}

</mosaic_0001>

<bundles_post_ra>
// kernel: tpu_custom_call.1
= control target key start
LH: loop header
LB: loop body
LE: loop exit
PB: predicated region body
PF: predicated region fallthrough
CT: control target
= control target key end

     0   :  { %8 = vsyncpa [#allocation3], 0  ;;  %s1529_s0 = inlined_call_operand.vmem [shape: bf16[512,32], index: 0, kind: input, shape index: {}]   ;;  %s1530_s1 = inlined_call_operand.vmem [shape: bf16[32,128], index: 1, kind: input, shape index: {}]   ;;  %s1531_s2 = inlined_call_operand.vmem [shape: f32[1,128], index: 2, kind: input, shape index: {}]   ;;  %s1532_s3 = inlined_call_operand.hbm [shape: bf16[512,128], index: 3, kind: output, shape index: {}]  }
   0x1   :  { %10 = vsyncpa [#allocation3 + $0x1], 0  ;;  %s1315_s12 = smov 0   ;;  %s1317_s13 = smov 0  }
   0x2   :  { %s1319_s14 = smov 0   ;;  %s1321_s15 = smov 0  }
   0x3   :  { %s1323_s16 = smov 0   ;;  %s1325_s17 = smov 0  }
   0x4 LB: > { %s869_s18 = sadd.s32 4294967295, %s1290_s17   ;;  %s870_s19 = sadd.s32 4294967294, %s1290_s17   ;;  %s1290_s17 = sphi %s1325_s17, %s16_s17   ;;  %s1286_s16 = sphi %s1323_s16, %s1539_s16   ;;  %s1282_s15 = sphi %s1321_s15, %s1538_s15   ;;  %s1278_s14 = sphi %s1319_s14, %s1537_s14   ;;  %s1274_s13 = sphi %s1317_s13, %s1536_s13   ;;  %s1270_s12 = sphi %s1315_s12, %s1535_s12  }
   0x5   : > { %s28_s20 = sadd.s32 1, %s1286_s16  ;;  %s115_s21 = sadd.s32 1, %s1278_s14 }
   0x6   : > { %p30_p0 = scmp.ge.s32.totalorder %s28_s20, 2  ;;  %p125_p1 = scmp.ne.s32.totalorder %s1278_s14, %s1274_s13 }
   0x7   : > { %p126_p2 = scmp.eq.s32.totalorder %s869_s18, 1  ;;  %p131_p3 = scmp.ne.s32.totalorder %s1274_s13, %s1270_s12 }
   0x8   : > { %s1541_s20 = smov (%p30_p0, %s28_s20), 0  ;;  %p132_p5 = scmp.eq.s32.totalorder %s870_s19, 1 }
   0x9   : > { %p1355_p4 = por %p126_p2, %p125_p1  ;;  %s110_s23 = ssub.s32 %s1286_s16, %s1541_s20 }
   0xa   : > { %p875_p6 = scmp.ge.s32.totalorder %s1290_s17, 1  ;;  %p113_p7 = scmp.eq.s32.totalorder %s110_s23, 0 }
   0xb   : > { %p1362_p8 = por %p132_p5, %p131_p3  ;;  %p172_p9 = scmp.lt.s32.totalorder %s1290_s17, 3 }
   0xc   : > { %s1368_s25 = scalar_select %p113_p7, %s1278_s14, %s115_s21  }
   0xd   : > { %p173_p10 = pnand %p875_p6, %p172_p9 }
   0xe   : > { %v1194_v0 = vld [vmem:[%s1530_s1] sm:$0xff] (!%p173_p10)   ;;  %s877_s28 = sshll.u32 (!%p173_p10), %s1282_s15, 5  ;;  %v1195_v1 = vld [vmem:[%s1530_s1 + $0x8] sm:$0xff] (!%p173_p10)   ;;  %vm353_vm0 = vcmask (!%p173_p10), 261120   ;;  %s200_s10 = sand.u32 (!%p173_p10), 1, %s1274_s13  }
   0xf   : > { %176 = sbr.rel (%p173_p10) target bundleno = 288 (0x120), region = 32  ;;  %p204_p11 = scmp.lt.s32.totalorder (!%p173_p10), %s877_s28, 63  ;;  %1097 = vmatprep.subr.bf16.mxu0 (!%p173_p10), %v1194_v0  ;;  %1133 = vmatprep.subr.bf16.mxu1 (!%p173_p10), %v1194_v0  ;;  %v1417_v18 = vld [vmem:[%s1531_s2] ss:$0 sm:$0xff] (!%p173_p10) }
  0x10   : > { %1098 = vmatpush3.bf16.msra.mxu0 (!%p173_p10), %v1194_v0  ;;  %1135 = vmatpush3.bf16.msra.mxu1 (!%p173_p10), %v1194_v0  ;;  %s876_s11 = sshll.u32 (!%p173_p10), %s200_s10, 7  ;;  %s983_s19 = sshll.u32 (!%p173_p10), %s1282_s15, 11 }
  0x11   : > { %1099 = vmatprep.subr.bf16.mxu0 (!%p173_p10), %v1195_v1  ;;  %1134 = vmatprep.subr.bf16.mxu1 (!%p173_p10), %v1195_v1  ;;  %s1430_s18 = scalar_lea.vmem (!%p173_p10), [#allocation2], %s876_s11  ;;  %s1473_s27 = scalar_lea.hbm (!%p173_p10), %s1532_s3, %s983_s19 }
  0x12   : > { %s770_s21 = sshll.u32 (!%p173_p10), %s1430_s18, 4  ;;  %s1483_s15 = scalar_lea.sflag (!%p173_p10), [#allocation3], %s200_s10  ;;  %s1475_s21 = int_to_ptr.vmem [resolvable:$true] %s770_s21 }
  0x13   : > { %s1292_s29 = smov (!%p173_p10), [#allocation2]  }
  0x14   : > { %1100 = vmatpush3.bf16.msra.mxu0 (!%p173_p10), %v1195_v1  ;;  %1136 = vmatpush3.bf16.msra.mxu1 (!%p173_p10), %v1195_v1  ;;  %s1216_s30 = sshll.u32 (!%p173_p10), %s1292_s29, 4  ;;  %s1217_s30 = int_to_ptr.vmem [resolvable:$false] %s1216_s30 }
  0x15   : > { %p1219_p1 = scmp.lt.s32.totalorder (!%p173_p10), %s1475_s21, %s1217_s30 }
  0x16   : > { %s1543_s28 = smov (!%p204_p11, %s877_s28), 63 }
  0x17   : > { %s878_s4 = sshll.u32 %s1543_s28, 2  ;;  %s1212_s28 = scalar_lea.vmem %s1475_s21, 2048 }
  0x18   : > { %s1380_s7 = scalar_lea.vmem %s1529_s0, %s878_s4  ;;  %p1213_p12 = scmp.ne.s32.totalorder %s1475_s21, %s1212_s28 }
  0x19   : > { %v1196_v2 = vld [vmem:[%s1380_s7] sm:$0xff]   ;;  %v1198_v4 = vld [vmem:[%s1380_s7 + $0x8] sm:$0xff]   ;;  %v1200_v6 = vld [vmem:[%s1380_s7 + $0x10] sm:$0xff]   ;;  %s1218_s4 = scalar_lea.vmem %s1217_s30, 4096 }
  0x1a   : > { %v1197_v3 = vld [vmem:[%s1380_s7 + $0x40] sm:$0xff]   ;;  %1101 = vmatprep.mubr.msk.bf16.mxu0 %vm353_vm0, %v1196_v2  ;;  %v1199_v5 = vld [vmem:[%s1380_s7 + $0x48] sm:$0xff]   ;;  %v1201_v7 = vld [vmem:[%s1380_s7 + $0x50] sm:$0xff]   ;;  %p1214_p13 = pnand %p1213_p12, %p1355_p4  ;;  %p1220_p2 = scmp.lt.s32.totalorder %s1218_s4, %s1212_s28 }
  0x1b   : > { %1117 = vmatprep.mubr.msk.bf16.mxu1 %vm353_vm0, %v1197_v3  ;;  %1102 = vmatmul.mubr.msk.bf16.vlgmr.msra.gmra.mrb[0].mxu0 %vm353_vm0, %v1198_v4  ;;  %v1202_v8 = vld [vmem:[%s1380_s7 + $0x18] sm:$0xff]   ;;  %v1204_v10 = vld [vmem:[%s1380_s7 + $0x20] sm:$0xff]   ;;  %v1206_v12 = vld [vmem:[%s1380_s7 + $0x28] sm:$0xff]  }
  0x1c   : > { %1118 = vmatmul.mubr.msk.bf16.vlgmr.msra.gmra.mrb[0].mxu1 %vm353_vm0, %v1199_v5  ;;  %1105 = vmatprep.mubr.msk.bf16.mxu0 %vm353_vm0, %v1200_v6  ;;  %v1203_v9 = vld [vmem:[%s1380_s7 + $0x58] sm:$0xff]   ;;  %v1205_v11 = vld [vmem:[%s1380_s7 + $0x60] sm:$0xff]   ;;  %v1207_v13 = vld [vmem:[%s1380_s7 + $0x68] sm:$0xff]   ;;  %p1215_p0 = pneg %p1214_p13  ;;  %p1221_p3 = por %p1220_p2, %p1219_p1 }
  0x1d   : > { %1121 = vmatprep.mubr.msk.bf16.mxu1 %vm353_vm0, %v1201_v7  ;;  %v1208_v14 = vld [vmem:[%s1380_s7 + $0x30] sm:$0xff]   ;;  %v1210_v16 = vld [vmem:[%s1380_s7 + $0x38] sm:$0xff]  }
  0x1e   : > { %v1209_v15 = vld [vmem:[%s1380_s7 + $0x70] sm:$0xff]   ;;  %v1211_v17 = vld [vmem:[%s1380_s7 + $0x78] sm:$0xff]   ;;  %p1222_p5 = pnand %p1221_p3, %p1215_p0 }
  0x23   : > { %1106 = vmatmul.mubr.msk.bf16.gmra.mrb[4].mxu0 %vm353_vm0, %v1202_v8 }
  0x24   : > { %1122 = vmatmul.mubr.msk.bf16.gmra.mrb[4].mxu1 %vm353_vm0, %v1203_v9  ;;  %1109 = vmatprep.mubr.msk.bf16.mxu0 %vm353_vm0, %v1204_v10 }
  0x25   : > { %1125 = vmatprep.mubr.msk.bf16.mxu1 %vm353_vm0, %v1205_v11 }
  0x2b   : > { %1110 = vmatmul.mubr.msk.bf16.gmra.mrb[8].mxu0 %vm353_vm0, %v1206_v12 }
  0x2c   : > { %1126 = vmatmul.mubr.msk.bf16.gmra.mrb[8].mxu1 %vm353_vm0, %v1207_v13  ;;  %1113 = vmatprep.mubr.msk.bf16.mxu0 %vm353_vm0, %v1208_v14 }
  0x2d   : > { %1129 = vmatprep.mubr.msk.bf16.mxu1 %vm353_vm0, %v1209_v15 }
  0x33   : > { %1114 = vmatmul.mubr.msk.bf16.gmra.mrb[12].mxu0 %vm353_vm0, %v1210_v16 }
  0x34   : > { %1130 = vmatmul.mubr.msk.bf16.gmra.mrb[12].mxu1 %vm353_vm0, %v1211_v17 }
  0xee   : > { %v1103_v19 = vpop.f32.mrb[0].mxu0 }
  0xef   : > { %v445_v20 = vadd.f32 %v1103_v19, %v1417_v18  ;;  %v1119_v21 = vpop.f32.mrb[0].mxu1  ;;  %v436_v22 = vpop.f32.mrb[1].mxu0 }
  0xf0   : > { %v509_v23 = vadd.f32 %v1119_v21, %v1417_v18  ;;  %v437_v24 = vadd.f32 %v1417_v18, %v436_v22  ;;  %v500_v25 = vpop.f32.mrb[1].mxu1  ;;  %v1104_v26 = vpop.f32.mrb[2].mxu0 }
  0xf1   : > { %v501_v27 = vadd.f32 %v1417_v18, %v500_v25  ;;  %v448_v28 = vadd.f32 %v1104_v26, %v1417_v18  ;;  %v1120_v29 = vpop.f32.mrb[2].mxu1  ;;  %v439_v30 = vpop.f32.mrb[3].mxu0  ;;  %v565_v34 = vmax.f32 %v445_v20, 0.0 }
  0xf2   : > { %v512_v31 = vadd.f32 %v1120_v29, %v1417_v18  ;;  %v440_v32 = vadd.f32 %v1417_v18, %v439_v30  ;;  %v503_v33 = vpop.f32.mrb[3].mxu1  ;;  %v581_v37 = vmax.f32 %v509_v23, 0.0  ;;  %v563_v38 = vmax.f32 %v437_v24, 0.0 }
  0xf3   : > { %v566_v35 = vmax.f32 %v448_v28, 0.0  ;;  %v504_v36 = vadd.f32 %v1417_v18, %v503_v33  ;;  %v579_v41 = vmax.f32 %v501_v27, 0.0 }
  0xf4   : > { %v582_v39 = vmax.f32 %v512_v31, 0.0  ;;  %v564_v40 = vmax.f32 %v440_v32, 0.0 }
  0xf5   : > { %v992_v42 = vpack.c.bf16 %v566_v35, %v565_v34  ;;  %v580_v43 = vmax.f32 %v504_v36, 0.0 }
  0xf6   : > { %v1032_v44 = vpack.c.bf16 %v582_v39, %v581_v37  ;;  %v987_v45 = vpack.c.bf16 %v564_v40, %v563_v38  ;;  %v1107_v46 = vpop.f32.mrb[4].mxu0 }
  0xf7   : > { %1064 = vst [vmem:[%s1430_s18 + $0x8] sm:$0xff] %v992_v42   ;;  %v1027_v47 = vpack.c.bf16 %v580_v43, %v579_v41  ;;  %v461_v48 = vadd.f32 %v1107_v46, %v1417_v18  ;;  %v1123_v49 = vpop.f32.mrb[4].mxu1  ;;  %v452_v50 = vpop.f32.mrb[5].mxu0 }
  0xf8   : > { %1072 = vst [vmem:[%s1430_s18 + $0x48] sm:$0xff] %v1032_v44   ;;  %988 = vst [vmem:[%s1430_s18] sm:$0xff] %v987_v45   ;;  %v525_v51 = vadd.f32 %v1123_v49, %v1417_v18  ;;  %v453_v52 = vadd.f32 %v1417_v18, %v452_v50  ;;  %v516_v53 = vpop.f32.mrb[5].mxu1  ;;  %v1108_v54 = vpop.f32.mrb[6].mxu0 }
  0xf9   : > { %1071 = vst [vmem:[%s1430_s18 + $0x40] sm:$0xff] %v1027_v47   ;;  %v517_v55 = vadd.f32 %v1417_v18, %v516_v53  ;;  %v464_v56 = vadd.f32 %v1108_v54, %v1417_v18  ;;  %v1124_v57 = vpop.f32.mrb[6].mxu1  ;;  %v455_v58 = vpop.f32.mrb[7].mxu0  ;;  %v569_v62 = vmax.f32 %v461_v48, 0.0 }
  0xfa   : > { %v528_v59 = vadd.f32 %v1124_v57, %v1417_v18  ;;  %v456_v60 = vadd.f32 %v1417_v18, %v455_v58  ;;  %v519_v61 = vpop.f32.mrb[7].mxu1  ;;  %v585_v1 = vmax.f32 %v525_v51, 0.0  ;;  %v567_v2 = vmax.f32 %v453_v52, 0.0 }
  0xfb   : > { %v570_v63 = vmax.f32 %v464_v56, 0.0  ;;  %v520_v0 = vadd.f32 %v1417_v18, %v519_v61  ;;  %v583_v5 = vmax.f32 %v517_v55, 0.0 }
  0xfc   : > { %v586_v3 = vmax.f32 %v528_v59, 0.0  ;;  %v568_v4 = vmax.f32 %v456_v60, 0.0 }
  0xfd   : > { %v1002_v6 = vpack.c.bf16 %v570_v63, %v569_v62  ;;  %v584_v7 = vmax.f32 %v520_v0, 0.0 }
  0xfe   : > { %v1042_v8 = vpack.c.bf16 %v586_v3, %v585_v1  ;;  %v997_v9 = vpack.c.bf16 %v568_v4, %v567_v2  ;;  %v1111_v10 = vpop.f32.mrb[8].mxu0 }
  0xff   : > { %1066 = vst [vmem:[%s1430_s18 + $0x18] sm:$0xff] %v1002_v6   ;;  %v1037_v11 = vpack.c.bf16 %v584_v7, %v583_v5  ;;  %v477_v12 = vadd.f32 %v1111_v10, %v1417_v18  ;;  %v1127_v13 = vpop.f32.mrb[8].mxu1  ;;  %v468_v14 = vpop.f32.mrb[9].mxu0 }
 0x100   : > { %1074 = vst [vmem:[%s1430_s18 + $0x58] sm:$0xff] %v1042_v8   ;;  %1065 = vst [vmem:[%s1430_s18 + $0x10] sm:$0xff] %v997_v9   ;;  %v541_v15 = vadd.f32 %v1127_v13, %v1417_v18  ;;  %v469_v16 = vadd.f32 %v1417_v18, %v468_v14  ;;  %v532_v17 = vpop.f32.mrb[9].mxu1  ;;  %v1112_v19 = vpop.f32.mrb[10].mxu0 }
 0x101   : > { %1073 = vst [vmem:[%s1430_s18 + $0x50] sm:$0xff] %v1037_v11   ;;  %v533_v20 = vadd.f32 %v1417_v18, %v532_v17  ;;  %v480_v21 = vadd.f32 %v1112_v19, %v1417_v18  ;;  %v1128_v22 = vpop.f32.mrb[10].mxu1  ;;  %v471_v23 = vpop.f32.mrb[11].mxu0  ;;  %v573_v27 = vmax.f32 %v477_v12, 0.0 }
 0x102   : > { %v544_v24 = vadd.f32 %v1128_v22, %v1417_v18  ;;  %v472_v25 = vadd.f32 %v1417_v18, %v471_v23  ;;  %v535_v26 = vpop.f32.mrb[11].mxu1  ;;  %v589_v30 = vmax.f32 %v541_v15, 0.0  ;;  %v571_v31 = vmax.f32 %v469_v16, 0.0 }
 0x103   : > { %v574_v28 = vmax.f32 %v480_v21, 0.0  ;;  %v536_v29 = vadd.f32 %v1417_v18, %v535_v26  ;;  %v587_v34 = vmax.f32 %v533_v20, 0.0 }
 0x104   : > { %v590_v32 = vmax.f32 %v544_v24, 0.0  ;;  %v572_v33 = vmax.f32 %v472_v25, 0.0 }
 0x105   : > { %v1012_v35 = vpack.c.bf16 %v574_v28, %v573_v27  ;;  %v588_v36 = vmax.f32 %v536_v29, 0.0 }
 0x106   : > { %v1052_v37 = vpack.c.bf16 %v590_v32, %v589_v30  ;;  %v1007_v38 = vpack.c.bf16 %v572_v33, %v571_v31  ;;  %v1115_v39 = vpop.f32.mrb[12].mxu0 }
 0x107   : > { %1068 = vst [vmem:[%s1430_s18 + $0x28] sm:$0xff] %v1012_v35   ;;  %v1047_v40 = vpack.c.bf16 %v588_v36, %v587_v34  ;;  %v493_v41 = vadd.f32 %v1115_v39, %v1417_v18  ;;  %v1131_v42 = vpop.f32.mrb[12].mxu1  ;;  %v484_v43 = vpop.f32.mrb[13].mxu0 }
 0x108   : > { %1076 = vst [vmem:[%s1430_s18 + $0x68] sm:$0xff] %v1052_v37   ;;  %1067 = vst [vmem:[%s1430_s18 + $0x20] sm:$0xff] %v1007_v38   ;;  %v557_v44 = vadd.f32 %v1131_v42, %v1417_v18  ;;  %v485_v45 = vadd.f32 %v1417_v18, %v484_v43  ;;  %v548_v46 = vpop.f32.mrb[13].mxu1  ;;  %v1116_v47 = vpop.f32.mrb[14].mxu0 }
 0x109   : > { %1075 = vst [vmem:[%s1430_s18 + $0x60] sm:$0xff] %v1047_v40   ;;  %v549_v48 = vadd.f32 %v1417_v18, %v548_v46  ;;  %v496_v49 = vadd.f32 %v1116_v47, %v1417_v18  ;;  %v1132_v50 = vpop.f32.mrb[14].mxu1  ;;  %v487_v51 = vpop.f32.mrb[15].mxu0  ;;  %v577_v55 = vmax.f32 %v493_v41, 0.0 }
 0x10a   : > { %v560_v52 = vadd.f32 %v1132_v50, %v1417_v18  ;;  %v488_v53 = vadd.f32 %v1417_v18, %v487_v51  ;;  %v551_v54 = vpop.f32.mrb[15].mxu1  ;;  %v593_v58 = vmax.f32 %v557_v44, 0.0  ;;  %v575_v59 = vmax.f32 %v485_v45, 0.0 }
 0x10b   : > { %v578_v56 = vmax.f32 %v496_v49, 0.0  ;;  %v552_v57 = vadd.f32 %v1417_v18, %v551_v54  ;;  %v591_v62 = vmax.f32 %v549_v48, 0.0 }
 0x10c   : > { %v594_v60 = vmax.f32 %v560_v52, 0.0  ;;  %v576_v61 = vmax.f32 %v488_v53, 0.0 }
 0x10d   : > { %v1022_v63 = vpack.c.bf16 %v578_v56, %v577_v55  ;;  %v592_v0 = vmax.f32 %v552_v57, 0.0 }
 0x10e   : > { %v1062_v1 = vpack.c.bf16 %v594_v60, %v593_v58  ;;  %v1017_v2 = vpack.c.bf16 %v576_v61, %v575_v59 }
 0x10f   : > { %1070 = vst [vmem:[%s1430_s18 + $0x38] sm:$0xff] %v1022_v63   ;;  %v1057_v18 = vpack.c.bf16 %v592_v0, %v591_v62 }
 0x110   : > { %1078 = vst [vmem:[%s1430_s18 + $0x78] sm:$0xff] %v1062_v1   ;;  %1069 = vst [vmem:[%s1430_s18 + $0x30] sm:$0xff] %v1017_v2  }
 0x111   : > { %1077 = vst [vmem:[%s1430_s18 + $0x70] sm:$0xff] %v1057_v18  }
 0x112   : > { %1225 = shalt.err (!%p1222_p5)
}
 0x113   : > { %s1226_s5 = scalar_lea.hbm %s1473_s27, 2048  ;;  %s1230_s8 = scalar_lea.hbm %s1532_s3, 4096 }
 0x114   : > { %p1227_p6 = scmp.ne.s32.totalorder %s1473_s27, %s1226_s5  ;;  %p1231_p10 = scmp.lt.u32.totalorder %s1473_s27, %s1532_s3 }
 0x115   : > { %p1232_p11 = scmp.lt.u32.totalorder %s1230_s8, %s1226_s5  ;;  %p1234_p13 = scmp.lt.u32.totalorder %s1226_s5, %s1473_s27 }
 0x116   : > { %p1228_p7 = pnand %p1227_p6, %p1355_p4 }
 0x117   : > { %p1233_p12 = por %p1232_p11, %p1231_p10 }
 0x118   : > { %p1229_p9 = pneg %p1228_p7 }
 0x119   : > { %p1235_p0 = por %p1234_p13, %p1233_p12 }
 0x11b   : > { %p1236_p1 = pnand %p1235_p0, %p1229_p9 }
 0x11d   : > { %1239 = shalt.err (!%p1236_p1)
}
 0x11e   : > { %s1293_s11 = smov 64   ;;  %s1294_s18 = smov 4  }
 0x11f   : > { %1137 = dma.vmem_to_hbm [thread:$0]  (%p1355_p4), %s1475_s21, 2048, %s1473_s27, %s1483_s15, %s1293_s11, %s1293_s11, %s1294_s18  }
 0x120 PF: > { %p1143_p2 = scmp.ge.s32.totalorder %s1290_s17, 2  ;;  %s785_s19 = sand.u32 1, %s1270_s12  }
 0x121   : > { %s786_s23 = scalar_lea.sflag [#allocation3], %s785_s19 }
 0x122   : > { %p1140_p3 = pnand %p1143_p2, %p1362_p8 }
 0x124   : > { %1265 = dma.done.wait (!%p1140_p3), %s786_s23, 2048  }
 0x125   : > { %1267 = vsyncadd (!%p1140_p3), %s786_s23, 4294965248  ;;  %s16_s17 = sadd.s32 1, %s1290_s17   ;;  %s1535_s12 = smov %s1274_s13 }
 0x126   : > { %p13_p5 = scmp.ge.s32.totalorder %s16_s17, 4   ;;  %s1536_s13 = smov %s1278_s14 }
 0x127   : > { %s1537_s14 = smov %s1368_s25  ;;  %s1538_s15 = smov %s1286_s16 }
 0x128   : > { %s1539_s16 = smov %s1541_s20  ;;  %15 = sbr.rel (!%p13_p5) target bundleno = 4 (0x4), region = 73 }
 0x12f   :  { %791 = vsyncpa [#allocation3], 1 }
 0x130   :  { %793 = vsyncpa [#allocation3 + $0x1], 1 }

</bundles_post_ra>
